<compile_context>
chip_gen: v7x
topology: tpu7x:2x2x1
jax: 0.10.0
libtpu: 0.0.40
codegen_flags: <defaults>
</compile_context>

<pallas_src>
import numpy as np
import jax
import jax.numpy as jnp
from jax.experimental import pallas as pl
from jax.experimental.pallas import tpu as pltpu


# ---- flat SMEM scalar-parameter layout (all float32) -----------------------
_O_W5 = 0      # (2 out, 2 in, 5 taps)  fully composed conv weights
_O_BIAS = 20   # (2,)   interior constant (propagated biases + "-R" term)
_O_E0C = 22    # (2,)   constant correction applied at n == 0
_O_E0L = 24    # (2,2)  x[:,0]-linear correction applied at n == 0
_O_ELC = 28    # (2,)   constant correction applied at n == N-1
_O_ELL = 30    # (2,2)  x[:,N-1]-linear correction applied at n == N-1
_NUM_SCALARS = 34


def _pack_scalars(params):
    """Host-side weight prep: compose the whole affine pre-BN chain
    (transform/translation convs -> offset fold -> final conv) into a single
    2->2 channel 5-tap conv + constant bias + boundary corrections."""
    f32 = jnp.float32
    wt = params["wt"].astype(f32)                 # (4, 2, 3) transform_matrix_conv
    bt = params["bt"].astype(f32)                 # (4,)
    wr = params["wr"].astype(f32)                 # (2, 2, 3) translation_conv
    br = params["br"].astype(f32)                 # (2,)
    wc = params["wc"].astype(f32)                 # (2, 20, 3) final conv (no bias)
    R = params["regular_matrix"].astype(f32)      # (2, 9)

    wcx = wc[:, 0:2, :]                           # final-conv weights on x itself
    wce = wc[:, 2::2, :]                          # ... on even offset channels (2,9,3)
    wco = wc[:, 3::2, :]                          # ... on odd offset channels  (2,9,3)

    # Fold the 18 offset channels onto the 6 mid channels [a, b, t0, c, d, t1]
    # (elementwise-mul + sum -> exact f32).
    a0e = jnp.sum(wce * R[0][None, :, None], axis=1)          # pairs with a
    a1e = jnp.sum(wce * R[1][None, :, None], axis=1)          # pairs with b
    se = jnp.sum(wce, axis=1)                                 # pairs with t0
    a0o = jnp.sum(wco * R[0][None, :, None], axis=1)          # pairs with c
    a1o = jnp.sum(wco * R[1][None, :, None], axis=1)          # pairs with d
    so = jnp.sum(wco, axis=1)                                 # pairs with t1
    fold = jnp.stack([a0e, a1e, se, a0o, a1o, so], axis=1)    # (2, 6, 3)

    # Inner 3-tap convs producing the mid channels.
    Wm = jnp.stack([wt[0], wt[1], wr[0], wt[2], wt[3], wr[1]], axis=0)  # (6,2,3)
    Bm = jnp.stack([bt[0], bt[1], br[0], bt[2], bt[3], br[1]])          # (6,)

    # Compose outer(3-tap over mids) o inner(3-tap over x) -> one 5-tap conv.
    W5 = jnp.zeros((2, 2, 5), f32)
    for t2 in range(3):
        for t1 in range(3):
            contrib = jnp.sum(fold[:, :, t2][:, :, None] * Wm[None, :, :, t1],
                              axis=1)                         # (2, 2)
            W5 = W5.at[:, :, t1 + t2].add(contrib)
    W5 = W5.at[:, :, 1:4].add(wcx)                # direct x channels of final conv

    # Interior constant: propagated inner biases + the "-R" constant.
    bias = (jnp.sum(fold * Bm[None, :, None], axis=(1, 2))
            - jnp.sum(a0e + a1o, axis=1))                                 # (2,)

    # Boundary corrections.  The outer conv zero-pads its inputs (the offset
    # channels), so at n==0 / n==N-1 the composed conv must drop the phantom
    # mid values it implicitly used (linear in x[:,0] / x[:,N-1]) and add back
    # the "-R" taps that fell outside the sequence.
    e0c = -jnp.sum(fold[:, :, 0] * Bm[None, :], axis=1) + a0e[:, 0] + a1o[:, 0]
    e0l = -jnp.sum(fold[:, :, 0][:, :, None] * Wm[None, :, :, 2], axis=1)   # (2,2)
    elc = -jnp.sum(fold[:, :, 2] * Bm[None, :], axis=1) + a0e[:, 2] + a1o[:, 2]
    ell = -jnp.sum(fold[:, :, 2][:, :, None] * Wm[None, :, :, 0], axis=1)   # (2,2)

    flat = jnp.concatenate([W5.reshape(-1), bias, e0c, e0l.reshape(-1),
                            elc, ell.reshape(-1)]).astype(f32)
    assert flat.shape[0] == _NUM_SCALARS
    return flat


def _make_stage1_kernel(n_valid: int, batch: int, batch_tile: int,
                        need_row_mask: bool):
    """Composed 5-tap conv; writes the pre-BN activation and per-tile BN
    partial sums (no cross-tile carry -> 'parallel' grid axis)."""

    def kernel(w_ref, x_ref, y_ref, st_ref):
        f32 = jnp.float32
        tb, npad = x_ref.shape[1], x_ref.shape[2]

        lane = jax.lax.broadcasted_iota(jnp.int32, (tb, npad), 1)
        at_first = (lane == 0).astype(f32)
        at_last = (lane == n_valid - 1).astype(f32)
        valid_b = lane < n_valid
        if need_row_mask:   # only needed when padded batch rows exist
            row = (jax.lax.broadcasted_iota(jnp.int32, (tb, npad), 0)
                   + pl.program_id(0) * batch_tile)
            valid_b = jnp.logical_and(valid_b, row < batch)
        valid = valid_b.astype(f32)

        def w(idx):                      # scalar weight from SMEM (static index)
            return w_ref[idx]

        # Shifted views u[n-2 .. n+2] along the lane axis.  The input is
        # zero-padded to npad >= n_valid + 2, so rolled-in lanes are zeros and
        # no per-tap masking is needed (conv zero padding comes for free).
        def taps5(u):
            return tuple(u if s == 2 else jnp.roll(u, 2 - s, axis=1)
                         for s in range(5))

        x0, x1 = x_ref[0], x_ref[1]
        taps = (taps5(x0), taps5(x1))
        xf = (at_first * x0, at_first * x1)       # x[:, 0]   at lane 0 only
        xl = (at_last * x0, at_last * x1)         # x[:, N-1] at lane N-1 only

        sums = []
        for o in range(2):
            acc = None
            for ci in range(2):
                for s in range(5):
                    term = w(_O_W5 + (o * 2 + ci) * 5 + s) * taps[ci][s]
                    acc = term if acc is None else acc + term
            acc = acc + w(_O_BIAS + o)
            acc = acc + at_first * w(_O_E0C + o) + at_last * w(_O_ELC + o)
            acc = (acc
                   + w(_O_E0L + o * 2 + 0) * xf[0] + w(_O_E0L + o * 2 + 1) * xf[1]
                   + w(_O_ELL + o * 2 + 0) * xl[0] + w(_O_ELL + o * 2 + 1) * xl[1])
            y_ref[o] = acc                        # pre-BN activation
            masked = acc * valid
            sums.append((jnp.sum(masked), jnp.sum(masked * masked)))

        # Per-tile BN partial sums -> rows 0..3 of this tile's (8, 128) block.
        rid = jax.lax.broadcasted_iota(jnp.int32, (8, 128), 0)
        st_ref[0] = ((rid == 0).astype(f32) * sums[0][0]
                     + (rid == 1).astype(f32) * sums[1][0]
                     + (rid == 2).astype(f32) * sums[0][1]
                     + (rid == 3).astype(f32) * sums[1][1])

    return kernel


def _stage2_kernel(ss_ref, y_ref, x_ref, o_ref):
    """Per-channel BN affine (precomputed scale/shift) + residual + LeakyReLU(0.2)."""
    for c in range(2):
        v = y_ref[c] * ss_ref[c] + ss_ref[2 + c] + x_ref[c]
        o_ref[c] = jnp.where(v >= 0.0, v, 0.2 * v)


def adapt_block_forward(x, params, *, max_batch_tile=None,
                        vmem_limit_bytes=48 * 1024 * 1024):
    """Pallas forward of AdaptBlock.  x: (B, 2, N) float32 -> (B, 2, N) float32."""
    B, C, N = x.shape
    assert C == 2, "AdaptBlock has inplanes == outplanes == 2"

    # Lane axis padded to a multiple of 128 with >= 2 lanes of slack so the
    # +-1 / +-2 rolled taps read zeros even when N is a multiple of 128.
    npad = ((N + 2 + 127) // 128) * 128
    bpad8 = ((B + 7) // 8) * 8

    # ---- VMEM-budgeted, stage-decoupled batch tiles -------------------------
    # Stage 1 carries ~25-30 live f32 temporaries per (b, n) position plus
    # double-buffered I/O; stage 2 is 3 double-buffered slabs + a few temps.
    budget = vmem_limit_bytes // 2
    bpp1, bpp2 = 160, 96                      # approx VMEM bytes per position
    cap = bpad8
    if max_batch_tile is not None:
        cap = min(cap, max(8, (max_batch_tile // 8) * 8))
    tb1 = int(min(max((budget // (bpp1 * npad) // 8) * 8, 8), cap))
    bpad = ((bpad8 + tb1 - 1) // tb1) * tb1
    # Stage-2 tile: largest multiple of tb1 that divides bpad and fits budget.
    k_budget = max(int(budget // (bpp2 * npad) // tb1), 1)
    k_cap = max(cap // tb1, 1)
    k_max = max(min(k_budget, k_cap), 1)
    k = max(kk for kk in range(1, k_max + 1) if bpad % (kk * tb1) == 0)
    tb2 = k * tb1
    grid1, grid2 = bpad // tb1, bpad // tb2
    # TODO(synk): for very long sequences also tile the lane (N) axis with a
    # 2-element halo; currently only the batch axis is tiled.

    # channel-major (2, B_pad, N_pad): batch on sublanes, sequence on lanes.
    xp = jnp.transpose(x, (1, 0, 2)).astype(jnp.float32)
    xp = jnp.pad(xp, ((0, 0), (0, bpad - B), (0, npad - N)))

    wsc = _pack_scalars(params)
    smem = pl.BlockSpec(memory_space=pltpu.MemorySpace.SMEM)
    blk1 = pl.BlockSpec((2, tb1, npad), lambda i: (0, i, 0))
    st_spec = pl.BlockSpec((1, 8, 128), lambda i: (i, 0, 0))
    cparams = pltpu.CompilerParams(dimension_semantics=("parallel",),
                                   vmem_limit_bytes=int(vmem_limit_bytes))

    y, part = pl.pallas_call(
        _make_stage1_kernel(N, B, tb1, bpad > B),
        out_shape=(jax.ShapeDtypeStruct((2, bpad, npad), jnp.float32),
                   jax.ShapeDtypeStruct((grid1, 8, 128), jnp.float32)),
        grid=(grid1,),
        in_specs=[smem, blk1],
        out_specs=(blk1, st_spec),
        compiler_params=cparams,
    )(wsc, xp)

    # Tiny glue on 4 scalars: training-mode batch stats -> BN affine scale/shift.
    stats = jnp.sum(part[:, 0:4, 0], axis=0)
    cnt = jnp.float32(B * N)
    mean = stats[0:2] / cnt
    var = stats[2:4] / cnt - mean * mean
    scale = params["gamma"].astype(jnp.float32) * jax.lax.rsqrt(var + 1e-5)
    shift = params["beta"].astype(jnp.float32) - mean * scale
    ss = jnp.concatenate([scale, shift])

    blk2 = pl.BlockSpec((2, tb2, npad), lambda i: (0, i, 0))
    out = pl.pallas_call(
        _stage2_kernel,
        out_shape=jax.ShapeDtypeStruct((2, bpad, npad), jnp.float32),
        grid=(grid2,),
        in_specs=[smem, blk2, blk2],
        out_specs=blk2,
        input_output_aliases={1: 0},          # write the result in place of y
        compiler_params=cparams,
    )(ss, y, xp)

    # unpack back to (B, 2, N)
    return jnp.transpose(out[:, :B, :N], (1, 0, 2))


def adapt_block_reference(x, params):
    """Pure-JAX reference mirroring the PyTorch forward (training-mode BN)."""
    R = params["regular_matrix"]
    wt, bt = params["wt"], params["bt"]
    wr, br = params["wr"], params["br"]
    wc = params["wc"]
    gamma, beta = params["gamma"], params["beta"]
    B, _, N = x.shape
    hi = jax.lax.Precision.HIGHEST

    def conv1d(a, w, b=None):
        n = a.shape[-1]
        ap = jnp.pad(a, ((0, 0), (0, 0), (1, 1)))
        out = sum(jnp.einsum('oi,bin->bon', w[:, :, k], ap[:, :, k:k + n],
                             precision=hi) for k in range(3))
        if b is not None:
            out = out + b[None, :, None]
        return out

    tm = conv1d(x, wt, bt)                                       # (B, 4, N)
    T = jnp.transpose(tm, (0, 2, 1)).reshape(B * N, 2, 2)
    off = jnp.matmul(T, R, precision=hi) - R                     # (B*N, 2, 9)
    off = jnp.transpose(off, (0, 2, 1)).reshape(B, N, 18)
    off = jnp.transpose(off, (0, 2, 1))                          # (B, 18, N)
    tr = conv1d(x, wr, br)                                       # (B, 2, N)
    off_even = off[:, 0::2, :] + tr[:, 0:1, :]
    off_odd = off[:, 1::2, :] + tr[:, 1:2, :]
    off = jnp.stack([off_even, off_odd], axis=2).reshape(B, 18, N)
    x_off = jnp.concatenate([x, off], axis=1)                    # (B, 20, N)
    out = conv1d(x_off, wc)                                      # (B, 2, N)
    mean = jnp.mean(out, axis=(0, 2), keepdims=True)
    var = jnp.mean(jnp.square(out - mean), axis=(0, 2), keepdims=True)
    out = (out - mean) / jnp.sqrt(var + 1e-5)
    out = out * gamma[None, :, None] + beta[None, :, None]
    out = out + x
    return jnp.where(out >= 0.0, out, 0.2 * out)


if __name__ == "__main__":
    key = jax.random.PRNGKey(0)
    ks = jax.random.split(key, 8)
    params = {
        "regular_matrix": jnp.array(
            [[-1, -1, -1, 0, 0, 0, 1, 1, 1],
             [-1, 0, 1, -1, 0, 1, -1, 0, 1]], dtype=jnp.float32),
        "wt": 0.3 * jax.random.normal(ks[0], (4, 2, 3), jnp.float32),   # transform_matrix_conv
        "bt": 0.1 * jax.random.normal(ks[1], (4,), jnp.float32),
        "wr": 0.3 * jax.random.normal(ks[2], (2, 2, 3), jnp.float32),   # translation_conv
        "br": 0.1 * jax.random.normal(ks[3], (2,), jnp.float32),
        "wc": 0.2 * jax.random.normal(ks[4], (2, 20, 3), jnp.float32),  # conv (no bias)
        "gamma": 1.0 + 0.1 * jax.random.normal(ks[5], (2,), jnp.float32),
        "beta": 0.1 * jax.random.normal(ks[6], (2,), jnp.float32),
    }

    # Case 1: small shape; exercises lane padding, boundary corrections and
    # padded-batch-row masking with a single tile per stage.
    x = jax.random.normal(ks[7], (2, 2, 64), jnp.float32)
    out = jax.block_until_ready(adapt_block_forward(x, params))
    ref = adapt_block_reference(x, params)
    np.testing.assert_allclose(np.asarray(out), np.asarray(ref),
                               rtol=1e-4, atol=1e-4)

    # Case 2: forces a small batch tile -> multi-step grid in both stages,
    # per-tile BN partial-sum reduction, partial last batch tile and partial
    # sequence.
    x2 = jax.random.normal(jax.random.PRNGKey(1), (19, 2, 100), jnp.float32)
    out2 = jax.block_until_ready(
        adapt_block_forward(x2, params, max_batch_tile=8))
    ref2 = adapt_block_reference(x2, params)
    np.testing.assert_allclose(np.asarray(out2), np.asarray(ref2),
                               rtol=1e-4, atol=1e-4)

    print("KERNEL_OK")
</pallas_src>

<mosaic_0001>
module attributes {stable_mosaic.version = 11 : i64} {
  func.func @kernel(%arg0: i32, %arg1: memref<34xf32, #tpu.memory_space<smem>>, %arg2: memref<2x8x128xf32, #tpu.memory_space<vmem>>, %arg3: memref<2x8x128xf32, #tpu.memory_space<vmem>>, %arg4: memref<1x8x128xf32, #tpu.memory_space<vmem>>) attributes {dimension_semantics = [#tpu.dimension_semantics<parallel>], iteration_bounds = array<i64: 1>, scalar_prefetch = 0 : i64, scratch_operands = 0 : i64, tpu.core_type = #tpu.core_type<tc>, window_params = [{transform_indices = @transform_0, window_bounds = array<i64: 34>}, {transform_indices = @transform_1, window_bounds = array<i64: 2, 8, 128>}, {transform_indices = @transform_2, window_bounds = array<i64: 2, 8, 128>}, {transform_indices = @transform_3, window_bounds = array<i64: 1, 8, 128>}]} {
    %0 = tpu.iota {dimensions = array<i32: 1>} : vector<8x128xi32>
    %c0_i32 = arith.constant 0 : i32
    %1 = vector.broadcast %c0_i32 : i32 to vector<8x128xi32>
    %2 = arith.cmpi eq, %0, %1 : vector<8x128xi32>
    %3 = arith.extui %2 : vector<8x128xi1> to vector<8x128xi32>
    %4 = arith.sitofp %3 : vector<8x128xi32> to vector<8x128xf32>
    %c63_i32 = arith.constant 63 : i32
    %5 = vector.broadcast %c63_i32 : i32 to vector<8x128xi32>
    %6 = arith.cmpi eq, %0, %5 : vector<8x128xi32>
    %7 = arith.extui %6 : vector<8x128xi1> to vector<8x128xi32>
    %8 = arith.sitofp %7 : vector<8x128xi32> to vector<8x128xf32>
    %c64_i32 = arith.constant 64 : i32
    %9 = vector.broadcast %c64_i32 : i32 to vector<8x128xi32>
    %10 = arith.cmpi slt, %0, %9 : vector<8x128xi32>
    %11 = tpu.iota {dimensions = array<i32: 0>} : vector<8x128xi32>
    %c8_i32 = arith.constant 8 : i32
    %12 = arith.muli %arg0, %c8_i32 : i32
    %13 = vector.broadcast %12 : i32 to vector<8x128xi32>
    %14 = arith.addi %11, %13 : vector<8x128xi32>
    %c2_i32 = arith.constant 2 : i32
    %15 = vector.broadcast %c2_i32 : i32 to vector<8x128xi32>
    %16 = arith.cmpi slt, %14, %15 : vector<8x128xi32>
    %17 = arith.andi %10, %16 : vector<8x128xi1>
    %18 = arith.extui %17 : vector<8x128xi1> to vector<8x128xi32>
    %19 = arith.sitofp %18 : vector<8x128xi32> to vector<8x128xf32>
    %c0 = arith.constant 0 : index
    %c0_0 = arith.constant 0 : index
    %c0_1 = arith.constant 0 : index
    %20 = vector.load %arg2[%c0, %c0_0, %c0_1] : memref<2x8x128xf32, #tpu.memory_space<vmem>>, vector<1x8x128xf32>
    %21 = vector.shape_cast %20 : vector<1x8x128xf32> to vector<8x128xf32>
    %c1 = arith.constant 1 : index
    %c0_2 = arith.constant 0 : index
    %c0_3 = arith.constant 0 : index
    %22 = vector.load %arg2[%c1, %c0_2, %c0_3] : memref<2x8x128xf32, #tpu.memory_space<vmem>>, vector<1x8x128xf32>
    %23 = vector.shape_cast %22 : vector<1x8x128xf32> to vector<8x128xf32>
    %24 = vector.extract_strided_slice %21 {offsets = [0, 126], sizes = [8, 2], strides = [1, 1]} : vector<8x128xf32> to vector<8x2xf32>
    %25 = vector.extract_strided_slice %21 {offsets = [0, 0], sizes = [8, 126], strides = [1, 1]} : vector<8x128xf32> to vector<8x126xf32>
    %26 = tpu.concatenate %24, %25 in 1 : vector<8x2xf32>, vector<8x126xf32> -> vector<8x128xf32>
    %27 = vector.extract_strided_slice %21 {offsets = [0, 127], sizes = [8, 1], strides = [1, 1]} : vector<8x128xf32> to vector<8x1xf32>
    %28 = vector.extract_strided_slice %21 {offsets = [0, 0], sizes = [8, 127], strides = [1, 1]} : vector<8x128xf32> to vector<8x127xf32>
    %29 = tpu.concatenate %27, %28 in 1 : vector<8x1xf32>, vector<8x127xf32> -> vector<8x128xf32>
    %30 = vector.extract_strided_slice %21 {offsets = [0, 1], sizes = [8, 127], strides = [1, 1]} : vector<8x128xf32> to vector<8x127xf32>
    %31 = vector.extract_strided_slice %21 {offsets = [0, 0], sizes = [8, 1], strides = [1, 1]} : vector<8x128xf32> to vector<8x1xf32>
    %32 = tpu.concatenate %30, %31 in 1 : vector<8x127xf32>, vector<8x1xf32> -> vector<8x128xf32>
    %33 = vector.extract_strided_slice %21 {offsets = [0, 2], sizes = [8, 126], strides = [1, 1]} : vector<8x128xf32> to vector<8x126xf32>
    %34 = vector.extract_strided_slice %21 {offsets = [0, 0], sizes = [8, 2], strides = [1, 1]} : vector<8x128xf32> to vector<8x2xf32>
    %35 = tpu.concatenate %33, %34 in 1 : vector<8x126xf32>, vector<8x2xf32> -> vector<8x128xf32>
    %36 = vector.extract_strided_slice %23 {offsets = [0, 126], sizes = [8, 2], strides = [1, 1]} : vector<8x128xf32> to vector<8x2xf32>
    %37 = vector.extract_strided_slice %23 {offsets = [0, 0], sizes = [8, 126], strides = [1, 1]} : vector<8x128xf32> to vector<8x126xf32>
    %38 = tpu.concatenate %36, %37 in 1 : vector<8x2xf32>, vector<8x126xf32> -> vector<8x128xf32>
    %39 = vector.extract_strided_slice %23 {offsets = [0, 127], sizes = [8, 1], strides = [1, 1]} : vector<8x128xf32> to vector<8x1xf32>
    %40 = vector.extract_strided_slice %23 {offsets = [0, 0], sizes = [8, 127], strides = [1, 1]} : vector<8x128xf32> to vector<8x127xf32>
    %41 = tpu.concatenate %39, %40 in 1 : vector<8x1xf32>, vector<8x127xf32> -> vector<8x128xf32>
    %42 = vector.extract_strided_slice %23 {offsets = [0, 1], sizes = [8, 127], strides = [1, 1]} : vector<8x128xf32> to vector<8x127xf32>
    %43 = vector.extract_strided_slice %23 {offsets = [0, 0], sizes = [8, 1], strides = [1, 1]} : vector<8x128xf32> to vector<8x1xf32>
    %44 = tpu.concatenate %42, %43 in 1 : vector<8x127xf32>, vector<8x1xf32> -> vector<8x128xf32>
    %45 = vector.extract_strided_slice %23 {offsets = [0, 2], sizes = [8, 126], strides = [1, 1]} : vector<8x128xf32> to vector<8x126xf32>
    %46 = vector.extract_strided_slice %23 {offsets = [0, 0], sizes = [8, 2], strides = [1, 1]} : vector<8x128xf32> to vector<8x2xf32>
    %47 = tpu.concatenate %45, %46 in 1 : vector<8x126xf32>, vector<8x2xf32> -> vector<8x128xf32>
    %48 = arith.mulf %4, %21 : vector<8x128xf32>
    %49 = arith.mulf %4, %23 : vector<8x128xf32>
    %50 = arith.mulf %8, %21 : vector<8x128xf32>
    %51 = arith.mulf %8, %23 : vector<8x128xf32>
    %c0_4 = arith.constant 0 : index
    %52 = memref.load %arg1[%c0_4] : memref<34xf32, #tpu.memory_space<smem>>
    %53 = vector.broadcast %52 : f32 to vector<8x128xf32>
    %54 = arith.mulf %53, %26 : vector<8x128xf32>
    %c1_5 = arith.constant 1 : index
    %55 = memref.load %arg1[%c1_5] : memref<34xf32, #tpu.memory_space<smem>>
    %56 = vector.broadcast %55 : f32 to vector<8x128xf32>
    %57 = arith.mulf %56, %29 : vector<8x128xf32>
    %58 = arith.addf %54, %57 : vector<8x128xf32>
    %c2 = arith.constant 2 : index
    %59 = memref.load %arg1[%c2] : memref<34xf32, #tpu.memory_space<smem>>
    %60 = vector.broadcast %59 : f32 to vector<8x128xf32>
    %61 = arith.mulf %60, %21 : vector<8x128xf32>
    %62 = arith.addf %58, %61 : vector<8x128xf32>
    %c3 = arith.constant 3 : index
    %63 = memref.load %arg1[%c3] : memref<34xf32, #tpu.memory_space<smem>>
    %64 = vector.broadcast %63 : f32 to vector<8x128xf32>
    %65 = arith.mulf %64, %32 : vector<8x128xf32>
    %66 = arith.addf %62, %65 : vector<8x128xf32>
    %c4 = arith.constant 4 : index
    %67 = memref.load %arg1[%c4] : memref<34xf32, #tpu.memory_space<smem>>
    %68 = vector.broadcast %67 : f32 to vector<8x128xf32>
    %69 = arith.mulf %68, %35 : vector<8x128xf32>
    %70 = arith.addf %66, %69 : vector<8x128xf32>
    %c5 = arith.constant 5 : index
    %71 = memref.load %arg1[%c5] : memref<34xf32, #tpu.memory_space<smem>>
    %72 = vector.broadcast %71 : f32 to vector<8x128xf32>
    %73 = arith.mulf %72, %38 : vector<8x128xf32>
    %74 = arith.addf %70, %73 : vector<8x128xf32>
    %c6 = arith.constant 6 : index
    %75 = memref.load %arg1[%c6] : memref<34xf32, #tpu.memory_space<smem>>
    %76 = vector.broadcast %75 : f32 to vector<8x128xf32>
    %77 = arith.mulf %76, %41 : vector<8x128xf32>
    %78 = arith.addf %74, %77 : vector<8x128xf32>
    %c7 = arith.constant 7 : index
    %79 = memref.load %arg1[%c7] : memref<34xf32, #tpu.memory_space<smem>>
    %80 = vector.broadcast %79 : f32 to vector<8x128xf32>
    %81 = arith.mulf %80, %23 : vector<8x128xf32>
    %82 = arith.addf %78, %81 : vector<8x128xf32>
    %c8 = arith.constant 8 : index
    %83 = memref.load %arg1[%c8] : memref<34xf32, #tpu.memory_space<smem>>
    %84 = vector.broadcast %83 : f32 to vector<8x128xf32>
    %85 = arith.mulf %84, %44 : vector<8x128xf32>
    %86 = arith.addf %82, %85 : vector<8x128xf32>
    %c9 = arith.constant 9 : index
    %87 = memref.load %arg1[%c9] : memref<34xf32, #tpu.memory_space<smem>>
    %88 = vector.broadcast %87 : f32 to vector<8x128xf32>
    %89 = arith.mulf %88, %47 : vector<8x128xf32>
    %90 = arith.addf %86, %89 : vector<8x128xf32>
    %c20 = arith.constant 20 : index
    %91 = memref.load %arg1[%c20] : memref<34xf32, #tpu.memory_space<smem>>
    %92 = vector.broadcast %91 : f32 to vector<8x128xf32>
    %93 = arith.addf %90, %92 : vector<8x128xf32>
    %c22 = arith.constant 22 : index
    %94 = memref.load %arg1[%c22] : memref<34xf32, #tpu.memory_space<smem>>
    %95 = vector.broadcast %94 : f32 to vector<8x128xf32>
    %96 = arith.mulf %4, %95 : vector<8x128xf32>
    %97 = arith.addf %93, %96 : vector<8x128xf32>
    %c28 = arith.constant 28 : index
    %98 = memref.load %arg1[%c28] : memref<34xf32, #tpu.memory_space<smem>>
    %99 = vector.broadcast %98 : f32 to vector<8x128xf32>
    %100 = arith.mulf %8, %99 : vector<8x128xf32>
    %101 = arith.addf %97, %100 : vector<8x128xf32>
    %c24 = arith.constant 24 : index
    %102 = memref.load %arg1[%c24] : memref<34xf32, #tpu.memory_space<smem>>
    %103 = vector.broadcast %102 : f32 to vector<8x128xf32>
    %104 = arith.mulf %103, %48 : vector<8x128xf32>
    %105 = arith.addf %101, %104 : vector<8x128xf32>
    %c25 = arith.constant 25 : index
    %106 = memref.load %arg1[%c25] : memref<34xf32, #tpu.memory_space<smem>>
    %107 = vector.broadcast %106 : f32 to vector<8x128xf32>
    %108 = arith.mulf %107, %49 : vector<8x128xf32>
    %109 = arith.addf %105, %108 : vector<8x128xf32>
    %c30 = arith.constant 30 : index
    %110 = memref.load %arg1[%c30] : memref<34xf32, #tpu.memory_space<smem>>
    %111 = vector.broadcast %110 : f32 to vector<8x128xf32>
    %112 = arith.mulf %111, %50 : vector<8x128xf32>
    %113 = arith.addf %109, %112 : vector<8x128xf32>
    %c31 = arith.constant 31 : index
    %114 = memref.load %arg1[%c31] : memref<34xf32, #tpu.memory_space<smem>>
    %115 = vector.broadcast %114 : f32 to vector<8x128xf32>
    %116 = arith.mulf %115, %51 : vector<8x128xf32>
    %117 = arith.addf %113, %116 : vector<8x128xf32>
    %c0_6 = arith.constant 0 : index
    %c0_7 = arith.constant 0 : index
    %c0_8 = arith.constant 0 : index
    %118 = vector.load %arg3[%c0_6, %c0_7, %c0_8] : memref<2x8x128xf32, #tpu.memory_space<vmem>>, vector<1x8x128xf32>
    %119 = vector.shape_cast %118 : vector<1x8x128xf32> to vector<8x128xf32>
    %120 = vector.shape_cast %117 : vector<8x128xf32> to vector<1x8x128xf32>
    tpu.vector_store %arg3[%c0_6, %c0_7, %c0_8], %120 {strides = array<i32>} : memref<2x8x128xf32, #tpu.memory_space<vmem>>, vector<1x8x128xf32>,
    %121 = arith.mulf %117, %19 : vector<8x128xf32>
    %122 = vector.shape_cast %121 : vector<8x128xf32> to vector<1x8x128xf32>
    %cst = arith.constant dense<0.000000e+00> : vector<1xf32>
    %123 = vector.multi_reduction <add>, %122, %cst [1, 2] : vector<1x8x128xf32> to vector<1xf32>
    %124 = vector.shape_cast %123 : vector<1xf32> to vector<1x1x1xf32>
    %125 = vector.extract %124[0, 0, 0] : f32 from vector<1x1x1xf32>
    %126 = arith.mulf %121, %121 : vector<8x128xf32>
    %127 = vector.shape_cast %126 : vector<8x128xf32> to vector<1x8x128xf32>
    %cst_9 = arith.constant dense<0.000000e+00> : vector<1xf32>
    %128 = vector.multi_reduction <add>, %127, %cst_9 [1, 2] : vector<1x8x128xf32> to vector<1xf32>
    %129 = vector.shape_cast %128 : vector<1xf32> to vector<1x1x1xf32>
    %130 = vector.extract %129[0, 0, 0] : f32 from vector<1x1x1xf32>
    %c10 = arith.constant 10 : index
    %131 = memref.load %arg1[%c10] : memref<34xf32, #tpu.memory_space<smem>>
    %132 = vector.broadcast %131 : f32 to vector<8x128xf32>
    %133 = arith.mulf %132, %26 : vector<8x128xf32>
    %c11 = arith.constant 11 : index
    %134 = memref.load %arg1[%c11] : memref<34xf32, #tpu.memory_space<smem>>
    %135 = vector.broadcast %134 : f32 to vector<8x128xf32>
    %136 = arith.mulf %135, %29 : vector<8x128xf32>
    %137 = arith.addf %133, %136 : vector<8x128xf32>
    %c12 = arith.constant 12 : index
    %138 = memref.load %arg1[%c12] : memref<34xf32, #tpu.memory_space<smem>>
    %139 = vector.broadcast %138 : f32 to vector<8x128xf32>
    %140 = arith.mulf %139, %21 : vector<8x128xf32>
    %141 = arith.addf %137, %140 : vector<8x128xf32>
    %c13 = arith.constant 13 : index
    %142 = memref.load %arg1[%c13] : memref<34xf32, #tpu.memory_space<smem>>
    %143 = vector.broadcast %142 : f32 to vector<8x128xf32>
    %144 = arith.mulf %143, %32 : vector<8x128xf32>
    %145 = arith.addf %141, %144 : vector<8x128xf32>
    %c14 = arith.constant 14 : index
    %146 = memref.load %arg1[%c14] : memref<34xf32, #tpu.memory_space<smem>>
    %147 = vector.broadcast %146 : f32 to vector<8x128xf32>
    %148 = arith.mulf %147, %35 : vector<8x128xf32>
    %149 = arith.addf %145, %148 : vector<8x128xf32>
    %c15 = arith.constant 15 : index
    %150 = memref.load %arg1[%c15] : memref<34xf32, #tpu.memory_space<smem>>
    %151 = vector.broadcast %150 : f32 to vector<8x128xf32>
    %152 = arith.mulf %151, %38 : vector<8x128xf32>
    %153 = arith.addf %149, %152 : vector<8x128xf32>
    %c16 = arith.constant 16 : index
    %154 = memref.load %arg1[%c16] : memref<34xf32, #tpu.memory_space<smem>>
    %155 = vector.broadcast %154 : f32 to vector<8x128xf32>
    %156 = arith.mulf %155, %41 : vector<8x128xf32>
    %157 = arith.addf %153, %156 : vector<8x128xf32>
    %c17 = arith.constant 17 : index
    %158 = memref.load %arg1[%c17] : memref<34xf32, #tpu.memory_space<smem>>
    %159 = vector.broadcast %158 : f32 to vector<8x128xf32>
    %160 = arith.mulf %159, %23 : vector<8x128xf32>
    %161 = arith.addf %157, %160 : vector<8x128xf32>
    %c18 = arith.constant 18 : index
    %162 = memref.load %arg1[%c18] : memref<34xf32, #tpu.memory_space<smem>>
    %163 = vector.broadcast %162 : f32 to vector<8x128xf32>
    %164 = arith.mulf %163, %44 : vector<8x128xf32>
    %165 = arith.addf %161, %164 : vector<8x128xf32>
    %c19 = arith.constant 19 : index
    %166 = memref.load %arg1[%c19] : memref<34xf32, #tpu.memory_space<smem>>
    %167 = vector.broadcast %166 : f32 to vector<8x128xf32>
    %168 = arith.mulf %167, %47 : vector<8x128xf32>
    %169 = arith.addf %165, %168 : vector<8x128xf32>
    %c21 = arith.constant 21 : index
    %170 = memref.load %arg1[%c21] : memref<34xf32, #tpu.memory_space<smem>>
    %171 = vector.broadcast %170 : f32 to vector<8x128xf32>
    %172 = arith.addf %169, %171 : vector<8x128xf32>
    %c23 = arith.constant 23 : index
    %173 = memref.load %arg1[%c23] : memref<34xf32, #tpu.memory_space<smem>>
    %174 = vector.broadcast %173 : f32 to vector<8x128xf32>
    %175 = arith.mulf %4, %174 : vector<8x128xf32>
    %176 = arith.addf %172, %175 : vector<8x128xf32>
    %c29 = arith.constant 29 : index
    %177 = memref.load %arg1[%c29] : memref<34xf32, #tpu.memory_space<smem>>
    %178 = vector.broadcast %177 : f32 to vector<8x128xf32>
    %179 = arith.mulf %8, %178 : vector<8x128xf32>
    %180 = arith.addf %176, %179 : vector<8x128xf32>
    %c26 = arith.constant 26 : index
    %181 = memref.load %arg1[%c26] : memref<34xf32, #tpu.memory_space<smem>>
    %182 = vector.broadcast %181 : f32 to vector<8x128xf32>
    %183 = arith.mulf %182, %48 : vector<8x128xf32>
    %184 = arith.addf %180, %183 : vector<8x128xf32>
    %c27 = arith.constant 27 : index
    %185 = memref.load %arg1[%c27] : memref<34xf32, #tpu.memory_space<smem>>
    %186 = vector.broadcast %185 : f32 to vector<8x128xf32>
    %187 = arith.mulf %186, %49 : vector<8x128xf32>
    %188 = arith.addf %184, %187 : vector<8x128xf32>
    %c32 = arith.constant 32 : index
    %189 = memref.load %arg1[%c32] : memref<34xf32, #tpu.memory_space<smem>>
    %190 = vector.broadcast %189 : f32 to vector<8x128xf32>
    %191 = arith.mulf %190, %50 : vector<8x128xf32>
    %192 = arith.addf %188, %191 : vector<8x128xf32>
    %c33 = arith.constant 33 : index
    %193 = memref.load %arg1[%c33] : memref<34xf32, #tpu.memory_space<smem>>
    %194 = vector.broadcast %193 : f32 to vector<8x128xf32>
    %195 = arith.mulf %194, %51 : vector<8x128xf32>
    %196 = arith.addf %192, %195 : vector<8x128xf32>
    %c1_10 = arith.constant 1 : index
    %c0_11 = arith.constant 0 : index
    %c0_12 = arith.constant 0 : index
    %197 = vector.load %arg3[%c1_10, %c0_11, %c0_12] : memref<2x8x128xf32, #tpu.memory_space<vmem>>, vector<1x8x128xf32>
    %198 = vector.shape_cast %197 : vector<1x8x128xf32> to vector<8x128xf32>
    %199 = vector.shape_cast %196 : vector<8x128xf32> to vector<1x8x128xf32>
    tpu.vector_store %arg3[%c1_10, %c0_11, %c0_12], %199 {strides = array<i32>} : memref<2x8x128xf32, #tpu.memory_space<vmem>>, vector<1x8x128xf32>,
    %200 = arith.mulf %196, %19 : vector<8x128xf32>
    %201 = vector.shape_cast %200 : vector<8x128xf32> to vector<1x8x128xf32>
    %cst_13 = arith.constant dense<0.000000e+00> : vector<1xf32>
    %202 = vector.multi_reduction <add>, %201, %cst_13 [1, 2] : vector<1x8x128xf32> to vector<1xf32>
    %203 = vector.shape_cast %202 : vector<1xf32> to vector<1x1x1xf32>
    %204 = vector.extract %203[0, 0, 0] : f32 from vector<1x1x1xf32>
    %205 = arith.mulf %200, %200 : vector<8x128xf32>
    %206 = vector.shape_cast %205 : vector<8x128xf32> to vector<1x8x128xf32>
    %cst_14 = arith.constant dense<0.000000e+00> : vector<1xf32>
    %207 = vector.multi_reduction <add>, %206, %cst_14 [1, 2] : vector<1x8x128xf32> to vector<1xf32>
    %208 = vector.shape_cast %207 : vector<1xf32> to vector<1x1x1xf32>
    %209 = vector.extract %208[0, 0, 0] : f32 from vector<1x1x1xf32>
    %210 = tpu.iota {dimensions = array<i32: 0>} : vector<8x128xi32>
    %c0_i32_15 = arith.constant 0 : i32
    %211 = vector.broadcast %c0_i32_15 : i32 to vector<8x128xi32>
    %212 = arith.cmpi eq, %210, %211 : vector<8x128xi32>
    %213 = arith.extui %212 : vector<8x128xi1> to vector<8x128xi32>
    %214 = arith.sitofp %213 : vector<8x128xi32> to vector<8x128xf32>
    %215 = vector.broadcast %125 : f32 to vector<8x128xf32>
    %216 = arith.mulf %214, %215 : vector<8x128xf32>
    %c1_i32 = arith.constant 1 : i32
    %217 = vector.broadcast %c1_i32 : i32 to vector<8x128xi32>
    %218 = arith.cmpi eq, %210, %217 : vector<8x128xi32>
    %219 = arith.extui %218 : vector<8x128xi1> to vector<8x128xi32>
    %220 = arith.sitofp %219 : vector<8x128xi32> to vector<8x128xf32>
    %221 = vector.broadcast %204 : f32 to vector<8x128xf32>
    %222 = arith.mulf %220, %221 : vector<8x128xf32>
    %223 = arith.addf %216, %222 : vector<8x128xf32>
    %c2_i32_16 = arith.constant 2 : i32
    %224 = vector.broadcast %c2_i32_16 : i32 to vector<8x128xi32>
    %225 = arith.cmpi eq, %210, %224 : vector<8x128xi32>
    %226 = arith.extui %225 : vector<8x128xi1> to vector<8x128xi32>
    %227 = arith.sitofp %226 : vector<8x128xi32> to vector<8x128xf32>
    %228 = vector.broadcast %130 : f32 to vector<8x128xf32>
    %229 = arith.mulf %227, %228 : vector<8x128xf32>
    %230 = arith.addf %223, %229 : vector<8x128xf32>
    %c3_i32 = arith.constant 3 : i32
    %231 = vector.broadcast %c3_i32 : i32 to vector<8x128xi32>
    %232 = arith.cmpi eq, %210, %231 : vector<8x128xi32>
    %233 = arith.extui %232 : vector<8x128xi1> to vector<8x128xi32>
    %234 = arith.sitofp %233 : vector<8x128xi32> to vector<8x128xf32>
    %235 = vector.broadcast %209 : f32 to vector<8x128xf32>
    %236 = arith.mulf %234, %235 : vector<8x128xf32>
    %237 = arith.addf %230, %236 : vector<8x128xf32>
    %c0_17 = arith.constant 0 : index
    %c0_18 = arith.constant 0 : index
    %c0_19 = arith.constant 0 : index
    %238 = vector.load %arg4[%c0_17, %c0_18, %c0_19] : memref<1x8x128xf32, #tpu.memory_space<vmem>>, vector<1x8x128xf32>
    %239 = vector.shape_cast %238 : vector<1x8x128xf32> to vector<8x128xf32>
    %240 = vector.shape_cast %237 : vector<8x128xf32> to vector<1x8x128xf32>
    tpu.vector_store %arg4[%c0_17, %c0_18, %c0_19], %240 {strides = array<i32>} : memref<1x8x128xf32, #tpu.memory_space<vmem>>, vector<1x8x128xf32>,
    return
  }
  func.func @transform_0(%arg0: i32) -> i32 {
    %c0_i32 = arith.constant 0 : i32
    %c0_i32_0 = arith.constant 0 : i32
    return %c0_i32 : i32
  }
  func.func @transform_1(%arg0: i32) -> (i32, i32, i32) {
    %c0_i32 = arith.constant 0 : i32
    %c0_i32_0 = arith.constant 0 : i32
    %c0_i32_1 = arith.constant 0 : i32
    return %c0_i32, %arg0, %c0_i32_0 : i32, i32, i32
  }
  func.func @transform_2(%arg0: i32) -> (i32, i32, i32) {
    %c0_i32 = arith.constant 0 : i32
    %c0_i32_0 = arith.constant 0 : i32
    %c0_i32_1 = arith.constant 0 : i32
    return %c0_i32, %arg0, %c0_i32_0 : i32, i32, i32
  }
  func.func @transform_3(%arg0: i32) -> (i32, i32, i32) {
    %c0_i32 = arith.constant 0 : i32
    %c0_i32_0 = arith.constant 0 : i32
    %c0_i32_1 = arith.constant 0 : i32
    return %arg0, %c0_i32, %c0_i32_0 : i32, i32, i32
  }
}

</mosaic_0001>

<bundles_post_ra>
// kernel: tpu_custom_call.1
= control target key start
LH: loop header
LB: loop body
LE: loop exit
PB: predicated region body
PF: predicated region fallthrough
CT: control target
= control target key end

     0   :  { %9 = vsyncpa [#allocation5], 0  ;;  %s677_s0 = inlined_call_operand.hbm [shape: f32[34], index: 0, kind: input, shape index: {}]   ;;  %s678_s1 = inlined_call_operand.hbm [shape: f32[2,8,128], index: 1, kind: input, shape index: {}]   ;;  %s679_s2 = inlined_call_operand.hbm [shape: f32[2,8,128], index: 2, kind: output, shape index: {0}]   ;;  %s680_s3 = inlined_call_operand.hbm [shape: f32[1,8,128], index: 3, kind: output, shape index: {1}]  }
   0x1   :  { %10 = vsyncpa [#allocation3], 0 }
   0x2   :  { %11 = vsyncpa [#allocation4], 0 }
   0x3   :  { %12 = vsyncpa [#allocation9], 0  ;;  %s381_s14 = scalar_lea.hbm %s677_s0, 16 }
   0x4   :  { %p382_p0 = scmp.ne.s32.totalorder %s677_s0, %s381_s14  ;;  %p385_p1 = scmp.lt.u32.totalorder %s381_s14, %s677_s0 }
   0x6   :  { %p387_p2 = pnand %p385_p1, %p382_p0 }
   0x8   :  { %390 = shalt.err (!%p387_p2)
}
   0x9   :  { %s465_s19 = smov [#allocation2]   ;;  %s466_s22 = smov [#allocation6]  }
   0xa   :  { %20 = dma.hbm_to_smem %s677_s0, 16, %s465_s19, [#allocation5]  }
   0xb   :  { %s26_s23 = sshll.u32 %s466_s22, 4  ;;  %s391_s26 = scalar_lea.hbm %s678_s1, 256  ;;  %s27_s23 = int_to_ptr.vmem [resolvable:$true] %s26_s23 }
   0xc   :  { %p392_p3 = scmp.ne.s32.totalorder %s678_s1, %s391_s26  ;;  %p395_p4 = scmp.lt.u32.totalorder %s391_s26, %s678_s1 }
   0xe   :  { %p397_p5 = pnand %p395_p4, %p392_p3 }
  0x10   :  { %400 = shalt.err (!%p397_p5)
}
  0x11   :  { %s401_s4 = scalar_lea.vmem %s27_s23, 256  ;;  %p406_p7 = scmp.lt.s32.totalorder %s27_s23, %s27_s23 }
  0x12   :  { %p402_p6 = scmp.ne.s32.totalorder %s27_s23, %s401_s4  ;;  %p407_p8 = scmp.lt.s32.totalorder %s401_s4, %s401_s4 }
  0x14   :  { %p408_p9 = por %p407_p8, %p406_p7 }
  0x16   :  { %p409_p10 = pnand %p408_p9, %p402_p6 }
  0x18   :  { %412 = shalt.err (!%p409_p10)
}
  0x19   :  { %s467_s0 = smov 128   ;;  %s468_s5 = smov 8  }
  0x1a   :  { %32 = dma.hbm_to_vmem [thread:$0]  %s678_s1, 256, %s27_s23, [#allocation3], %s467_s0, %s467_s0, %s468_s5  }
  0x1b   :  { %457 = dma.done.wait [#allocation5], 16  }
  0x1c   :  { %458 = vsyncadd [#allocation5], 4294967280 }
  0x1d   :  { %459 = dma.done.wait [#allocation3], 256  }
  0x1e   :  { %460 = vsyncadd [#allocation3], 4294967040 }
  0x1f   :  { %39 = sfence }
  0x20   :  { %v523_v0 = vld [vmem:[#allocation6] sm:$0xff]  ;;  %s469_s8 = smov 2   ;;  %s470_s9 = smov 127   ;;  %v529_v1 = vld [vmem:[#allocation6 + $0x8] sm:$0xff]  ;;  %v40_v24 = vlaneseq }
  0x21   :  { %62 = vrot.lane.b32.xlu0 %v523_v0, %s469_s8  ;;  %68 = vrot.lane.b32.xlu1 %v523_v0, %s470_s9  ;;  %s471_s10 = smov 1   ;;  %s472_s11 = smov 126  }
  0x22   :  { %s91_s1 = sld [smem:[#allocation2]]  ;;  %s341_s12 = sld [smem:[#allocation2 + $0xa]]  ;;  %v580_v43 = vand.u32 127, %v40_v24 }
  0x23   :  { %s326_s13 = sld [smem:[#allocation2 + $0x2]]  ;;  %s343_s14 = sld [smem:[#allocation2 + $0xc]] }
  0x24   :  { %s325_s15 = sld [smem:[#allocation2 + $0x1]]  ;;  %s342_s16 = sld [smem:[#allocation2 + $0xb]]  ;;  %vm42_vm0 = vcmp.eq.s32.totalorder %v580_v43, 0  ;;  %vm45_vm1 = vcmp.eq.s32.totalorder %v580_v43, 63  ;;  %vm48_vm2 = vcmp.lt.s32.totalorder %v580_v43, 64 }
  0x25   :  { %65 = vrot.lane.b32.xlu0 %v523_v0, %s471_s10  ;;  %71 = vrot.lane.b32.xlu1 %v523_v0, %s472_s11  ;;  %s535_s17 = sld [smem:[#allocation2 + $0x3]]  ;;  %s537_s18 = sld [smem:[#allocation2 + $0xd]] }
  0x26   :  { %s539_s19 = sld [smem:[#allocation2 + $0x4]]  ;;  %s541_s20 = sld [smem:[#allocation2 + $0xe]] }
  0x27   :  { %s543_s21 = sld [smem:[#allocation2 + $0x5]]  ;;  %s545_s22 = sld [smem:[#allocation2 + $0xf]] }
  0x28   :  { %v92_v6 = vstv %s91_s1  ;;  %v179_v7 = vstv %s341_s12  ;;  %s547_s23 = sld [smem:[#allocation2 + $0x6]]  ;;  %s549_s24 = sld [smem:[#allocation2 + $0x10]] }
  0x29   :  { %75 = vrot.lane.b32.xlu0 %v529_v1, %s469_s8  ;;  %78 = vrot.lane.b32.xlu1 %v529_v1, %s471_s10  ;;  %v99_v3 = vstv %s326_s13  ;;  %v186_v4 = vstv %s343_s14  ;;  %s555_s25 = sld [smem:[#allocation2 + $0x7]]  ;;  %s557_s26 = sld [smem:[#allocation2 + $0x11]] }
  0x2a   :  { %v95_v8 = vstv %s325_s15  ;;  %v182_v9 = vstv %s342_s16  ;;  %v100_v13 = vmul.f32 %v99_v3, %v523_v0  ;;  %v187_v14 = vmul.f32 %v186_v4, %v523_v0  ;;  %s561_s27 = sld [smem:[#allocation2 + $0x8]]  ;;  %s563_s28 = sld [smem:[#allocation2 + $0x12]] }
  0x2b   :  { %v103_v11 = vstv %s535_s17  ;;  %v190_v12 = vstv %s537_s18  ;;  %s567_s29 = sld [smem:[#allocation2 + $0x9]]  ;;  %s569_s30 = sld [smem:[#allocation2 + $0x13]] }
  0x2c   :  { %v107_v20 = vstv %s539_s19  ;;  %v194_v21 = vstv %s541_s20  ;;  %s575_s4 = sld [smem:[#allocation2 + $0x16]]  ;;  %s577_s6 = sld [smem:[#allocation2 + $0x17]] }
  0x2d   :  { %81 = vrot.lane.b32.xlu0 %v529_v1, %s470_s9  ;;  %84 = vrot.lane.b32.xlu1 %v529_v1, %s472_s11  ;;  %v111_v27 = vstv %s543_s21  ;;  %v198_v28 = vstv %s545_s22  ;;  %s582_s7 = sld [smem:[#allocation2 + $0x14]]  ;;  %s588_s9 = sld [smem:[#allocation2 + $0x15]] }
  0x2e   :  { %v115_v34 = vstv %s547_s23  ;;  %v202_v35 = vstv %s549_s24  ;;  %s584_s8 = sld [smem:[#allocation2 + $0x1c]]  ;;  %s590_s10 = sld [smem:[#allocation2 + $0x1d]] }
  0x2f   :  { %v119_v41 = vstv %s555_s25  ;;  %v206_v42 = vstv %s557_s26  ;;  %s597_s11 = sld [smem:[#allocation2 + $0x18]]  ;;  %s599_s1 = sld [smem:[#allocation2 + $0x1a]] }
  0x30   :  { %v123_v48 = vstv %s561_s27  ;;  %v210_v49 = vstv %s563_s28  ;;  %v120_v53 = vmul.f32 %v119_v41, %v529_v1  ;;  %v207_v54 = vmul.f32 %v206_v42, %v529_v1  ;;  %s602_s12 = sld [smem:[#allocation2 + $0x19]]  ;;  %s604_s13 = sld [smem:[#allocation2 + $0x1b]] }
  0x31   :  { %v127_v55 = vstv %s567_s29  ;;  %v214_v56 = vstv %s569_s30  ;;  %s611_s14 = sld [smem:[#allocation2 + $0x1e]]  ;;  %s613_s15 = sld [smem:[#allocation2 + $0x20]] }
  0x32   :  { %v134_v4 = vstv %s575_s4  ;;  %s621_s16 = sld [smem:[#allocation2 + $0x1f]]  ;;  %s623_s17 = sld [smem:[#allocation2 + $0x21]] }
  0x33   :  { %s474_s18 = smov [#allocation7]  }
  0x34   :  { %s295_s19 = sshll.u32 %s474_s18, 4  ;;  %s296_s19 = int_to_ptr.vmem [resolvable:$true] %s295_s19 }
  0x35   :  { %s413_s20 = scalar_lea.vmem %s296_s19, 256  ;;  %p418_p12 = scmp.lt.s32.totalorder %s296_s19, %s296_s19 }
  0x36   :  { %p414_p11 = scmp.ne.s32.totalorder %s296_s19, %s413_s20  ;;  %p419_p13 = scmp.lt.s32.totalorder %s413_s20, %s413_s20 }
  0x38   :  { %p420_p0 = por %p419_p13, %p418_p12 }
  0x3a   :  { %p421_p1 = pnand %p420_p0, %p414_p11 }
  0x93   :  { %v63_v2 = vpop.permute.xlu0 %62  ;;  %v69_v5 = vpop.permute.xlu1 %68 }
  0x94   :  { %v93_v15 = vmul.f32 %v92_v6, %v63_v2  ;;  %v180_v16 = vmul.f32 %v179_v7, %v63_v2  ;;  %v104_v25 = vmul.f32 %v103_v11, %v69_v5  ;;  %v191_v26 = vmul.f32 %v190_v12, %v69_v5 }
  0x95   :  { %v221_v5 = vstv %s577_s6  ;;  %v473_v6 = vmov 0.0   ;;  %v131_v12 = vstv %s582_s7 }
  0x96   :  { %v322_v7 = vsel %vm42_vm0, 1.0, %v473_v6 }
  0x97   :  { %v66_v10 = vpop.permute.xlu0 %65  ;;  %v72_v19 = vpop.permute.xlu1 %71  ;;  %v87_v11 = vmul.f32 %v322_v7, %v523_v0 }
  0x98   :  { %v96_v17 = vmul.f32 %v95_v8, %v66_v10  ;;  %v183_v18 = vmul.f32 %v182_v9, %v66_v10  ;;  %v108_v32 = vmul.f32 %v107_v20, %v72_v19  ;;  %v195_v33 = vmul.f32 %v194_v21, %v72_v19 }
  0x99   :  { %v323_v10 = vsel %vm45_vm1, 1.0, %v473_v6  ;;  %v222_v19 = vmul.f32 %v322_v7, %v221_v5  ;;  %v88_v20 = vmul.f32 %v322_v7, %v529_v1  ;;  %v142_v21 = vstv %s597_s11 }
  0x9a   :  { %v97_v22 = vadd.f32 %v96_v17, %v93_v15  ;;  %v184_v23 = vadd.f32 %v183_v18, %v180_v16  ;;  %v225_v15 = vstv %s590_s10  ;;  %v135_v17 = vmul.f32 %v322_v7, %v134_v4 }
  0x9b   :  { %v76_v29 = vpop.permute.xlu0 %75  ;;  %v79_v36 = vpop.permute.xlu1 %78 }
  0x9c   :  { %v101_v30 = vadd.f32 %v100_v13, %v97_v22  ;;  %v188_v31 = vadd.f32 %v187_v14, %v184_v23  ;;  %v112_v39 = vmul.f32 %v111_v27, %v76_v29  ;;  %v199_v40 = vmul.f32 %v198_v28, %v76_v29 }
  0x9d   :  { %v116_v46 = vmul.f32 %v115_v34, %v79_v36  ;;  %v203_v47 = vmul.f32 %v202_v35, %v79_v36  ;;  %v138_v13 = vstv %s584_s8  ;;  %v218_v14 = vstv %s588_s9 }
  0x9e   :  { %v105_v37 = vadd.f32 %v104_v25, %v101_v30  ;;  %v192_v38 = vadd.f32 %v191_v26, %v188_v31  ;;  %v229_v22 = vstv %s599_s1  ;;  %v139_v25 = vmul.f32 %v323_v10, %v138_v13 }
  0x9f   :  { %v82_v50 = vpop.permute.xlu0 %81  ;;  %v85_v57 = vpop.permute.xlu1 %84  ;;  %v226_v27 = vmul.f32 %v323_v10, %v225_v15  ;;  %v629_v28 = vshrl.u32 %v40_v24, 7  ;;  %v89_v29 = vmul.f32 %v323_v10, %v523_v0  ;;  %v146_v30 = vstv %s602_s12 }
  0xa0   :  { %v109_v44 = vadd.f32 %v108_v32, %v105_v37  ;;  %v196_v45 = vadd.f32 %v195_v33, %v192_v38  ;;  %v124_v60 = vmul.f32 %v123_v48, %v82_v50  ;;  %v211_v61 = vmul.f32 %v210_v49, %v82_v50 }
  0xa1   :  { %v128_v2 = vmul.f32 %v127_v55, %v85_v57  ;;  %v215_v3 = vmul.f32 %v214_v56, %v85_v57  ;;  %v233_v31 = vstv %s604_s13  ;;  %v143_v34 = vmul.f32 %v142_v21, %v87_v11 }
  0xa2   :  { %v113_v51 = vadd.f32 %v112_v39, %v109_v44  ;;  %v200_v52 = vadd.f32 %v199_v40, %v196_v45  ;;  %v230_v35 = vmul.f32 %v229_v22, %v87_v11  ;;  %v90_v36 = vmul.f32 %v323_v10, %v529_v1 }
  0xa3   :  { %v150_v37 = vstv %s611_s14  ;;  %v237_v38 = vstv %s613_s15  ;;  %v147_v41 = vmul.f32 %v146_v30, %v88_v20  ;;  %v234_v42 = vmul.f32 %v233_v31, %v88_v20 }
  0xa4   :  { %v117_v58 = vadd.f32 %v116_v46, %v113_v51  ;;  %v204_v59 = vadd.f32 %v203_v47, %v200_v52  ;;  %vm54_vm3 = vcmp.lt.s32.totalorder %v629_v28, 2  ;;  %v154_v0 = vstv %s621_s16 }
  0xa5   :  { %v241_v24 = vstv %s623_s17  ;;  %v151_v45 = vmul.f32 %v150_v37, %v89_v29  ;;  %v238_v47 = vmul.f32 %v237_v38, %v89_v29  ;;  %vm55_vm4 = vmand %vm48_vm2, %vm54_vm3  ;;  %v155_v49 = vmul.f32 %v154_v0, %v90_v36 }
  0xa6   :  { %v121_v62 = vadd.f32 %v120_v53, %v117_v58  ;;  %v208_v63 = vadd.f32 %v207_v54, %v204_v59  ;;  %v242_v50 = vmul.f32 %v241_v24, %v90_v36  ;;  %v324_v53 = vsel %vm55_vm4, 1.0, %v473_v6 }
  0xa8   :  { %v125_v8 = vadd.f32 %v124_v60, %v121_v62  ;;  %v212_v9 = vadd.f32 %v211_v61, %v208_v63 }
  0xaa   :  { %v129_v16 = vadd.f32 %v128_v2, %v125_v8  ;;  %v216_v18 = vadd.f32 %v215_v3, %v212_v9 }
  0xac   :  { %v132_v23 = vadd.f32 %v131_v12, %v129_v16  ;;  %v219_v26 = vadd.f32 %v218_v14, %v216_v18 }
  0xae   :  { %v136_v32 = vadd.f32 %v135_v17, %v132_v23  ;;  %v223_v33 = vadd.f32 %v222_v19, %v219_v26 }
  0xb0   :  { %v140_v39 = vadd.f32 %v139_v25, %v136_v32  ;;  %v227_v40 = vadd.f32 %v226_v27, %v223_v33 }
  0xb2   :  { %v144_v44 = vadd.f32 %v143_v34, %v140_v39  ;;  %v231_v46 = vadd.f32 %v230_v35, %v227_v40 }
  0xb4   :  { %v148_v48 = vadd.f32 %v147_v41, %v144_v44  ;;  %v235_v1 = vadd.f32 %v234_v42, %v231_v46 }
  0xb6   :  { %v152_v51 = vadd.f32 %v151_v45, %v148_v48  ;;  %v239_v52 = vadd.f32 %v238_v47, %v235_v1 }
  0xb8   :  { %v156_v54 = vadd.f32 %v155_v49, %v152_v51  ;;  %v243_v55 = vadd.f32 %v242_v50, %v239_v52 }
  0xba   :  { %v158_v43 = vmul.f32 %v324_v53, %v156_v54  ;;  %157 = vst [vmem:[#allocation7] sm:$0xff] %v156_v54  ;;  %245 = vst [vmem:[#allocation7 + $0x8] sm:$0xff] %v243_v55  ;;  %v246_v57 = vmul.f32 %v324_v53, %v243_v55 }
  0xbc   :  { %159 = vadd.xlane.f32.xlu0 %v158_v43  ;;  %v168_v56 = vmul.f32 %v158_v43, %v158_v43  ;;  %v256_v58 = vmul.f32 %v246_v57, %v246_v57 }
  0xbe   :  { %169 = vadd.xlane.f32.xlu1 %v168_v56 }
  0xc0   :  { %247 = vadd.xlane.f32.xlu0 %v246_v57 }
  0xc4   :  { %257 = vadd.xlane.f32.xlu0 %v256_v58 }
  0xc5   :  { %424 = shalt.err (!%p421_p1)
}
  0xc6   :  { %s425_s23 = scalar_lea.hbm %s679_s2, 256 }
  0xc7   :  { %p426_p2 = scmp.ne.s32.totalorder %s679_s2, %s425_s23  ;;  %p429_p3 = scmp.lt.u32.totalorder %s425_s23, %s679_s2 }
  0xc9   :  { %p431_p4 = pnand %p429_p3, %p426_p2 }
  0xcb   :  { %434 = shalt.err (!%p431_p4)
}
  0xcc   :  { %301 = dma.vmem_to_hbm [thread:$0]  %s296_s19, 256, %s679_s2, [#allocation4], %s467_s0, %s467_s0, %s468_s5   ;;  %vm266_vm5 = vcmp.eq.s32.totalorder %v629_v28, 0  ;;  %vm271_vm6 = vcmp.eq.s32.totalorder %v629_v28, 1  ;;  %vm277_vm7 = vcmp.eq.s32.totalorder %v629_v28, 2  ;;  %vm283_vm8 = vcmp.eq.s32.totalorder %v629_v28, 3 }
  0xcd   :  { %v358_v27 = vsel %vm266_vm5, 1.0, %v473_v6  ;;  %v359_v30 = vsel %vm271_vm6, 1.0, %v473_v6  ;;  %v360_v31 = vsel %vm277_vm7, 1.0, %v473_v6  ;;  %v361_v36 = vsel %vm283_vm8, 1.0, %v473_v6  ;;  %s475_s4 = smov [#allocation8]  }
  0xce   :  { %s308_s6 = sshll.u32 %s475_s4, 4  ;;  %s309_s6 = int_to_ptr.vmem [resolvable:$true] %s308_s6 }
  0xcf   :  { %s435_s7 = scalar_lea.vmem %s309_s6, 128  ;;  %p440_p6 = scmp.lt.s32.totalorder %s309_s6, %s309_s6 }
  0xd0   :  { %p436_p5 = scmp.ne.s32.totalorder %s309_s6, %s435_s7  ;;  %p441_p7 = scmp.lt.s32.totalorder %s435_s7, %s435_s7 }
  0xd2   :  { %p442_p8 = por %p441_p7, %p440_p6 }
  0xd4   :  { %p443_p9 = pnand %p442_p8, %p436_p5 }
 0x149   :  { %v160_v59 = vpop.xlane.xlu0 %159 }
 0x14a   :  { %v161_v60 = vrot.slane %v160_v59, 4 }
 0x14b   :  { %v170_v61 = vpop.xlane.xlu1 %169 }
 0x14c   :  { %v162_v62 = vadd.f32 %v161_v60, %v160_v59  ;;  %v171_v63 = vrot.slane %v170_v61, 4 }
 0x14d   :  { %v248_v2 = vpop.xlane.xlu0 %247 }
 0x14e   :  { %v163_v3 = vrot.slane %v162_v62, 2  ;;  %v172_v4 = vadd.f32 %v171_v63, %v170_v61  ;;  %v249_v5 = vrot.slane %v248_v2, 4 }
 0x150   :  { %v173_v7 = vrot.slane %v172_v4, 2  ;;  %v250_v8 = vadd.f32 %v249_v5, %v248_v2  ;;  %v164_v9 = vadd.f32 %v163_v3, %v162_v62 }
 0x151   :  { %v258_v10 = vpop.xlane.xlu0 %257 }
 0x152   :  { %v174_v11 = vadd.f32 %v173_v7, %v172_v4  ;;  %v251_v12 = vrot.slane %v250_v8, 2  ;;  %v259_v13 = vrot.slane %v258_v10, 4  ;;  %v165_v14 = vrot.slane %v164_v9, 1 }
 0x154   :  { %v260_v15 = vadd.f32 %v259_v13, %v258_v10  ;;  %v166_v16 = vadd.f32 %v165_v14, %v164_v9  ;;  %v175_v17 = vrot.slane %v174_v11, 1  ;;  %v252_v18 = vadd.f32 %v251_v12, %v250_v8 }
 0x156   :  { %v261_v19 = vrot.slane %v260_v15, 2  ;;  %362 = vpush %v166_v16  ;;  %v176_v20 = vadd.f32 %v175_v17, %v174_v11  ;;  %v253_v21 = vrot.slane %v252_v18, 1 }
 0x158   :  { %v262_v22 = vadd.f32 %v261_v19, %v260_v15  ;;  %364 = vpush %v176_v20  ;;  %v254_v23 = vadd.f32 %v253_v21, %v252_v18 }
 0x15a   :  { %366 = vpush %v254_v23  ;;  %v263_v25 = vrot.slane %v262_v22, 1 }
 0x15c   :  { %v264_v26 = vadd.f32 %v263_v25, %v262_v22 }
 0x15e   :  { %368 = vpush %v264_v26 }
 0x187   :  { %s363_s2 = spop %362 }
 0x188   :  { %v269_v29 = vstv %s363_s2 }
 0x189   :  { %s365_s0 = spop %364  ;;  %v270_v34 = vmul.f32 %v358_v27, %v269_v29 }
 0x18a   :  { %v280_v32 = vstv %s365_s0 }
 0x18b   :  { %s367_s5 = spop %366  ;;  %v281_v37 = vmul.f32 %v360_v31, %v280_v32 }
 0x18c   :  { %v274_v33 = vstv %s367_s5 }
 0x18d   :  { %v275_v35 = vmul.f32 %v359_v30, %v274_v33 }
 0x18f   :  { %v276_v38 = vadd.f32 %v275_v35, %v270_v34  ;;  %s369_s30 = spop %368 }
 0x190   :  { %v286_v39 = vstv %s369_s30 }
 0x191   :  { %v287_v40 = vmul.f32 %v361_v36, %v286_v39  ;;  %v282_v41 = vadd.f32 %v281_v37, %v276_v38 }
 0x193   :  { %v288_v42 = vadd.f32 %v287_v40, %v282_v41 }
 0x195   :  { %289 = vst [vmem:[#allocation8] sm:$0xff] %v288_v42 }
 0x196   :  { %446 = shalt.err (!%p443_p9)
}
 0x197   :  { %s447_s10 = scalar_lea.hbm %s680_s3, 128 }
 0x198   :  { %p448_p10 = scmp.ne.s32.totalorder %s680_s3, %s447_s10  ;;  %p451_p11 = scmp.lt.u32.totalorder %s447_s10, %s680_s3 }
 0x19a   :  { %p453_p12 = pnand %p451_p11, %p448_p10 }
 0x19c   :  { %456 = shalt.err (!%p453_p12)
}
 0x19d   :  { %311 = dma.vmem_to_hbm [thread:$0]  %s309_s6, 128, %s680_s3, [#allocation9]  }
 0x19e   :  { %461 = dma.done.wait [#allocation4], 256  }
 0x19f   :  { %462 = vsyncadd [#allocation4], 4294967040 }
 0x1a0   :  { %463 = dma.done.wait [#allocation9], 128  }
 0x1a1   :  { %464 = vsyncadd [#allocation9], 4294967168 }
 0x1a2   :  { %318 = vsyncpa [#allocation3], 1 }
 0x1a3   :  { %319 = vsyncpa [#allocation4], 1 }
 0x1a4   :  { %320 = vsyncpa [#allocation9], 1 }
 0x1a5   :  { %321 = vsyncpa [#allocation5], 1 }

</bundles_post_ra>
